<compile_context>
chip_gen: v6e
topology: v6e:2x2x1
jax: 0.10.0
libtpu: 0.0.40
codegen_flags: <defaults>
</compile_context>

<pallas_src>
import jax
import jax.numpy as jnp
from jax.experimental import pallas as pl
from jax.experimental.pallas import tpu as pltpu


def _round_up(x, m):
    return (x + m - 1) // m * m


# ----------------------------- Pallas kernel -------------------------------

def _residual_block_kernel(x_ref, w_ref, s_ref, t_ref, o_ref):
    x = x_ref[...]                                             # (TM, Dp) bf16
    # Linear on the MXU, f32 accumulation.
    y = jnp.dot(x, w_ref[...], preferred_element_type=jnp.float32)
    # Folded bias + BatchNorm affine (inference stats), ReLU, residual add.
    y = y * s_ref[...] + t_ref[...]
    y = jnp.maximum(y, 0.0)
    # Dropout is identity in eval mode.
    o_ref[...] = y + x.astype(jnp.float32)


# ------------------------------ wrapper -------------------------------------

def residual_block(x, w, b, gamma, beta, running_mean, running_var, *,
                   eps=1e-5, block_m=512, compute_dtype=jnp.bfloat16):
    """Fused ResidualBlock forward: relu(bn(x @ w.T + b)) + x   (eval mode).

    `w` is the PyTorch nn.Linear weight in (out, in) layout.
    """
    M, D = x.shape
    assert w.shape == (D, D), w.shape

    # Fold bias + BatchNorm affine into one scale and one shift per channel:
    #   bn(z) = (z - mean) * gamma / sqrt(var + eps) + beta = z * s + t'
    # with z = x @ w.T + b  =>  y * s + t,  t = beta + (b - mean) * s.
    s = gamma.astype(jnp.float32) * jax.lax.rsqrt(
        running_var.astype(jnp.float32) + eps)
    t = beta.astype(jnp.float32) + (b.astype(jnp.float32)
                                    - running_mean.astype(jnp.float32)) * s

    # Lane-dense feature dim: pad D up to a multiple of 128.
    Dp = _round_up(D, 128)
    # Large row tiles for pipelining; clamp for small batches, pad M to a
    # multiple of the tile so there is no ragged last block.
    block_m = max(8, min(block_m, _round_up(M, 8)))
    Mp = _round_up(M, block_m)

    x_p = jnp.zeros((Mp, Dp), compute_dtype).at[:M, :D].set(
        x.astype(compute_dtype))
    w_p = jnp.zeros((Dp, Dp), compute_dtype).at[:D, :D].set(
        w.T.astype(compute_dtype))                  # (in, out) for x @ W
    s_p = jnp.zeros((1, Dp), jnp.float32).at[0, :D].set(s)
    t_p = jnp.zeros((1, Dp), jnp.float32).at[0, :D].set(t)

    grid = (Mp // block_m,)
    row_spec = pl.BlockSpec((block_m, Dp), lambda i: (i, 0))
    # Grid-invariant weight: constant index_map, nothing to pipeline -> keep a
    # single VMEM buffer (halves weight residency; matters on v7x's 64 MiB).
    mat_spec = pl.BlockSpec((Dp, Dp), lambda i: (0, 0),
                            pipeline_mode=pl.Buffered(1))
    vec_spec = pl.BlockSpec((1, Dp), lambda i: (0, 0))

    cbytes = jnp.dtype(compute_dtype).itemsize
    vmem_need = (2 * block_m * Dp * cbytes      # x tile, double-buffered
                 + Dp * Dp * cbytes             # weight, single buffer
                 + 2 * 2 * Dp * 4               # s, t
                 + 2 * block_m * Dp * 4)        # out tile, double-buffered
    vmem_limit = int(min(vmem_need + (8 << 20), 100 << 20))

    cost = pl.CostEstimate(
        flops=2 * Mp * Dp * Dp,
        bytes_accessed=(Mp * Dp * cbytes + Dp * Dp * cbytes
                        + 2 * Dp * 4 + Mp * Dp * 4),
        transcendentals=0)

    out = pl.pallas_call(
        _residual_block_kernel,
        out_shape=jax.ShapeDtypeStruct((Mp, Dp), jnp.float32),
        grid=grid,
        in_specs=[row_spec, mat_spec, vec_spec, vec_spec],
        out_specs=row_spec,
        compiler_params=pltpu.CompilerParams(
            dimension_semantics=("parallel",),
            vmem_limit_bytes=vmem_limit),
        cost_estimate=cost,
    )(x_p, w_p, s_p, t_p)

    return out[:M, :D]


# ----------------------------- reference ------------------------------------

def residual_block_ref(x, w, b, gamma, beta, mean, var, eps=1e-5):
    y = x @ w.T + b
    y = (y - mean) / jnp.sqrt(var + eps) * gamma + beta
    y = jnp.maximum(y, 0.0)
    return y + x


# ------------------------------- main ---------------------------------------

if __name__ == "__main__":
    key = jax.random.PRNGKey(0)
    k_x, k_w, k_b, k_g, k_be, k_m, k_v = jax.random.split(key, 7)

    B, DIM = 64, 32                                            # (batch, dim)

    x = jax.random.normal(k_x, (B, DIM), jnp.float32)
    # PyTorch nn.Linear weight layout: (out, in).
    w = 0.1 * jax.random.normal(k_w, (DIM, DIM), jnp.float32)
    b = 0.05 * jax.random.normal(k_b, (DIM,), jnp.float32)
    gamma = 1.0 + 0.1 * jax.random.normal(k_g, (DIM,), jnp.float32)
    beta = 0.1 * jax.random.normal(k_be, (DIM,), jnp.float32)
    running_mean = 0.1 * jax.random.normal(k_m, (DIM,), jnp.float32)
    running_var = jax.random.uniform(k_v, (DIM,), jnp.float32,
                                     minval=0.5, maxval=1.5)

    out = jax.jit(residual_block)(x, w, b, gamma, beta,
                                  running_mean, running_var)
    out = jax.block_until_ready(out)

    ref = residual_block_ref(x, w, b, gamma, beta, running_mean, running_var)

    assert out.shape == (B, DIM), out.shape
    assert bool(jnp.all(jnp.isfinite(out)))
    max_err = float(jnp.max(jnp.abs(out - ref)))
    # bf16 matmul inputs / bf16-quantized residual => relaxed tolerance.
    assert bool(jnp.allclose(out, ref, atol=3e-2, rtol=3e-2)), max_err
    print("KERNEL_OK")
</pallas_src>

<mosaic_0001>
module attributes {stable_mosaic.version = 11 : i64} {
  func.func @_residual_block_kernel(%arg0: i32, %arg1: memref<64x128xbf16, #tpu.memory_space<vmem>>, %arg2: memref<128x128xbf16, #tpu.memory_space<vmem>>, %arg3: memref<1x128xf32, #tpu.memory_space<vmem>>, %arg4: memref<1x128xf32, #tpu.memory_space<vmem>>, %arg5: memref<64x128xf32, #tpu.memory_space<vmem>>) attributes {dimension_semantics = [#tpu.dimension_semantics<parallel>], iteration_bounds = array<i64: 1>, scalar_prefetch = 0 : i64, scratch_operands = 0 : i64, tpu.core_type = #tpu.core_type<tc>, window_params = [{transform_indices = @transform_0, window_bounds = array<i64: 64, 128>}, {pipeline_mode = #tpu.pipeline_mode<synchronous>, transform_indices = @transform_1, window_bounds = array<i64: 128, 128>}, {pipeline_mode = #tpu.pipeline_mode<synchronous>, transform_indices = @transform_2, window_bounds = array<i64: 1, 128>}, {pipeline_mode = #tpu.pipeline_mode<synchronous>, transform_indices = @transform_3, window_bounds = array<i64: 1, 128>}, {transform_indices = @transform_4, window_bounds = array<i64: 64, 128>}]} {
    %c0 = arith.constant 0 : index
    %c0_0 = arith.constant 0 : index
    %0 = vector.load %arg1[%c0, %c0_0] : memref<64x128xbf16, #tpu.memory_space<vmem>>, vector<64x128xbf16>
    %c0_1 = arith.constant 0 : index
    %c0_2 = arith.constant 0 : index
    %1 = vector.load %arg2[%c0_1, %c0_2] : memref<128x128xbf16, #tpu.memory_space<vmem>>, vector<128x128xbf16>
    %cst = arith.constant dense<0.000000e+00> : vector<64x128xf32>
    %2 = tpu.matmul %0, %1, %cst {dimension_numbers = #tpu.dot_dimension_numbers<[1], [0], [0], [1], [0, 0, 1, 1], [], []>} : vector<64x128xbf16>, vector<128x128xbf16>, vector<64x128xf32> -> vector<64x128xf32>
    %c0_3 = arith.constant 0 : index
    %c0_4 = arith.constant 0 : index
    %3 = vector.load %arg3[%c0_3, %c0_4] : memref<1x128xf32, #tpu.memory_space<vmem>>, vector<1x128xf32>
    %4 = vector.broadcast %3 : vector<1x128xf32> to vector<64x128xf32>
    %5 = arith.mulf %2, %4 : vector<64x128xf32>
    %c0_5 = arith.constant 0 : index
    %c0_6 = arith.constant 0 : index
    %6 = vector.load %arg4[%c0_5, %c0_6] : memref<1x128xf32, #tpu.memory_space<vmem>>, vector<1x128xf32>
    %7 = vector.broadcast %6 : vector<1x128xf32> to vector<64x128xf32>
    %8 = arith.addf %5, %7 : vector<64x128xf32>
    %cst_7 = arith.constant 0.000000e+00 : f32
    %9 = vector.broadcast %cst_7 : f32 to vector<64x128xf32>
    %10 = arith.maximumf %8, %9 : vector<64x128xf32>
    %11 = arith.extf %0 : vector<64x128xbf16> to vector<64x128xf32>
    %12 = arith.addf %10, %11 : vector<64x128xf32>
    %c0_8 = arith.constant 0 : index
    %c0_9 = arith.constant 0 : index
    %13 = vector.load %arg5[%c0_8, %c0_9] : memref<64x128xf32, #tpu.memory_space<vmem>>, vector<64x128xf32>
    tpu.vector_store %arg5[%c0_8, %c0_9], %12 {strides = array<i32>} : memref<64x128xf32, #tpu.memory_space<vmem>>, vector<64x128xf32>,
    return
  }
  func.func @transform_0(%arg0: i32) -> (i32, i32) {
    %c0_i32 = arith.constant 0 : i32
    %c0_i32_0 = arith.constant 0 : i32
    return %arg0, %c0_i32 : i32, i32
  }
  func.func @transform_1(%arg0: i32) -> (i32, i32) {
    %c0_i32 = arith.constant 0 : i32
    %c0_i32_0 = arith.constant 0 : i32
    %c0_i32_1 = arith.constant 0 : i32
    return %c0_i32, %c0_i32_0 : i32, i32
  }
  func.func @transform_2(%arg0: i32) -> (i32, i32) {
    %c0_i32 = arith.constant 0 : i32
    %c0_i32_0 = arith.constant 0 : i32
    %c0_i32_1 = arith.constant 0 : i32
    return %c0_i32, %c0_i32_0 : i32, i32
  }
  func.func @transform_3(%arg0: i32) -> (i32, i32) {
    %c0_i32 = arith.constant 0 : i32
    %c0_i32_0 = arith.constant 0 : i32
    %c0_i32_1 = arith.constant 0 : i32
    return %c0_i32, %c0_i32_0 : i32, i32
  }
  func.func @transform_4(%arg0: i32) -> (i32, i32) {
    %c0_i32 = arith.constant 0 : i32
    %c0_i32_0 = arith.constant 0 : i32
    return %arg0, %c0_i32 : i32, i32
  }
}

</mosaic_0001>

<bundles_post_ra>
// kernel: residual_block.1
= control target key start
LH: loop header
LB: loop body
LE: loop exit
PB: predicated region body
PF: predicated region fallthrough
CT: control target
= control target key end

     0   :  { %s428_s1 = inlined_call_operand.vmem [shape: bf16[128,128], index: 1, kind: input, shape index: {}]   ;;  %s429_s0 = inlined_call_operand.vmem [shape: bf16[64,128], index: 0, kind: input, shape index: {}]   ;;  %s430_s2 = inlined_call_operand.vmem [shape: f32[1,128], index: 2, kind: input, shape index: {}]   ;;  %s431_s3 = inlined_call_operand.vmem [shape: f32[1,128], index: 3, kind: input, shape index: {}]   ;;  %s432_s4 = inlined_call_operand.vmem [shape: f32[64,128], index: 4, kind: output, shape index: {}]  }
   0x1   :  { %v311_v0 = vld [vmem:[%s428_s1 + $0x38] sm:$0xff]   ;;  %v312_v1 = vld [vmem:[%s428_s1 + $0x30] sm:$0xff]   ;;  %v313_v2 = vld [vmem:[%s428_s1 + $0x28] sm:$0xff]  }
   0x2   :  { %271 = vmatprep.subr.bf16.mxu0 %v311_v0  ;;  %295 = vmatprep.subr.bf16.mxu1 %v311_v0  ;;  %v314_v3 = vld [vmem:[%s428_s1 + $0x20] sm:$0xff]   ;;  %v372_v5 = vld [vmem:[%s429_s0 + $0x10] sm:$0xff]   ;;  %v315_v6 = vld [vmem:[%s428_s1 + $0x18] sm:$0xff]  }
   0x3   :  { %272 = vmatpush3.bf16.msra.mxu0 %v311_v0  ;;  %303 = vmatpush3.bf16.msra.mxu1 %v311_v0  ;;  %v367_v4 = vld [vmem:[%s429_s0] sm:$0xff]   ;;  %v316_v7 = vld [vmem:[%s428_s1 + $0x10] sm:$0xff]   ;;  %v317_v8 = vld [vmem:[%s428_s1 + $0x8] sm:$0xff]   ;;  %v221_v27 = vunpack.c.l.bf16 %v372_v5  ;;  %v222_v49 = vunpack.c.h.bf16 %v372_v5 }
   0x4   :  { %273 = vmatprep.subr.bf16.mxu0 %v312_v1  ;;  %296 = vmatprep.subr.bf16.mxu1 %v312_v1  ;;  %v318_v9 = vld [vmem:[%s428_s1] sm:$0xff]   ;;  %v20_v10 = vld [vmem:[%s429_s0 + $0x8] sm:$0xff]   ;;  %v24_v11 = vld [vmem:[%s429_s0 + $0x18] sm:$0xff]   ;;  %v217_v26 = vunpack.c.l.bf16 %v367_v4  ;;  %v218_v48 = vunpack.c.h.bf16 %v367_v4 }
   0x5   :  { %287 = vmatprep.mubr.bf16.mxu0 %v367_v4  ;;  %291 = vmatprep.mubr.bf16.mxu1 %v372_v5  ;;  %v257_v12 = vld [vmem:[%s430_s2] ss:$0 sm:$0xff]  ;;  %v219_v18 = vunpack.c.l.bf16 %v20_v10  ;;  %v223_v19 = vunpack.c.l.bf16 %v24_v11  ;;  %v220_v34 = vunpack.c.h.bf16 %v20_v10  ;;  %v224_v35 = vunpack.c.h.bf16 %v24_v11 }
   0x6   :  { %v258_v14 = vld [vmem:[%s431_s3] ss:$0 sm:$0xff] }
   0x7   :  { %274 = vmatpush3.bf16.msra.mxu0 %v312_v1  ;;  %304 = vmatpush3.bf16.msra.mxu1 %v312_v1 }
   0x8   :  { %275 = vmatprep.subr.bf16.mxu0 %v313_v2  ;;  %297 = vmatprep.subr.bf16.mxu1 %v313_v2 }
   0xb   :  { %276 = vmatpush3.bf16.msra.mxu0 %v313_v2  ;;  %305 = vmatpush3.bf16.msra.mxu1 %v313_v2 }
   0xc   :  { %277 = vmatprep.subr.bf16.mxu0 %v314_v3  ;;  %298 = vmatprep.subr.bf16.mxu1 %v314_v3 }
   0xf   :  { %278 = vmatpush3.bf16.msra.mxu0 %v314_v3  ;;  %306 = vmatpush3.bf16.msra.mxu1 %v314_v3 }
  0x10   :  { %279 = vmatprep.subr.bf16.mxu0 %v315_v6  ;;  %299 = vmatprep.subr.bf16.mxu1 %v315_v6 }
  0x13   :  { %280 = vmatpush3.bf16.msra.mxu0 %v315_v6  ;;  %307 = vmatpush3.bf16.msra.mxu1 %v315_v6 }
  0x14   :  { %281 = vmatprep.subr.bf16.mxu0 %v316_v7  ;;  %300 = vmatprep.subr.bf16.mxu1 %v316_v7 }
  0x17   :  { %282 = vmatpush3.bf16.msra.mxu0 %v316_v7  ;;  %308 = vmatpush3.bf16.msra.mxu1 %v316_v7 }
  0x18   :  { %283 = vmatprep.subr.bf16.mxu0 %v317_v8  ;;  %301 = vmatprep.subr.bf16.mxu1 %v317_v8 }
  0x1b   :  { %284 = vmatpush3.bf16.msra.mxu0 %v317_v8  ;;  %309 = vmatpush3.bf16.msra.mxu1 %v317_v8 }
  0x1c   :  { %285 = vmatprep.subr.bf16.mxu0 %v318_v9  ;;  %302 = vmatprep.subr.bf16.mxu1 %v318_v9 }
  0x1f   :  { %286 = vmatpush3.bf16.msra.mxu0 %v318_v9  ;;  %310 = vmatpush3.bf16.msra.mxu1 %v318_v9 }
  0x22   :  { %288 = vmatmul.mubr.bf16.vlgmr.msra.gmra.mxu0 %v20_v10  ;;  %292 = vmatmul.mubr.bf16.vlgmr.msra.gmra.mxu1 %v24_v11 }
  0xe2   :  { %v289_v13 = vpop.f32.mrf.mxu0  ;;  %v293_v15 = vpop.f32.mrf.mxu1 }
  0xe3   :  { %v188_v16 = vmul.f32 %v289_v13, %v257_v12  ;;  %v192_v17 = vmul.f32 %v293_v15, %v257_v12 }
  0xe4   :  { %v148_v20 = vpop.f32.mrf.mxu0  ;;  %v164_v21 = vpop.f32.mrf.mxu1 }
  0xe5   :  { %v203_v22 = vadd.f32 %v258_v14, %v188_v16  ;;  %v207_v23 = vadd.f32 %v258_v14, %v192_v17  ;;  %v186_v24 = vmul.f32 %v257_v12, %v148_v20  ;;  %v190_v25 = vmul.f32 %v257_v12, %v164_v21 }
  0xe6   :  { %v290_v28 = vpop.f32.mrf.mxu0  ;;  %v294_v29 = vpop.f32.mrf.mxu1 }
  0xe7   :  { %v211_v30 = vmax.f32 %v203_v22, 0.0  ;;  %v215_v31 = vmax.f32 %v207_v23, 0.0  ;;  %v201_v32 = vadd.f32 %v258_v14, %v186_v24  ;;  %v205_v33 = vadd.f32 %v258_v14, %v190_v25 }
  0xe8   :  { %v189_v36 = vmul.f32 %v290_v28, %v257_v12  ;;  %v193_v37 = vmul.f32 %v294_v29, %v257_v12  ;;  %v151_v38 = vpop.f32.mrf.mxu0  ;;  %v167_v39 = vpop.f32.mrf.mxu1 }
  0xe9   :  { %v227_v40 = vadd.f32 %v219_v18, %v211_v30  ;;  %v231_v41 = vadd.f32 %v223_v19, %v215_v31  ;;  %v209_v42 = vmax.f32 %v201_v32, 0.0  ;;  %v213_v43 = vmax.f32 %v205_v33, 0.0 }
  0xea   :  { %v204_v44 = vadd.f32 %v258_v14, %v189_v36  ;;  %v208_v45 = vadd.f32 %v258_v14, %v193_v37  ;;  %v187_v46 = vmul.f32 %v257_v12, %v151_v38  ;;  %v191_v47 = vmul.f32 %v257_v12, %v167_v39 }
  0xeb   :  { %235 = vst [vmem:[%s432_s4 + $0x10] sm:$0xff] %v227_v40  ;;  %239 = vst [vmem:[%s432_s4 + $0x30] sm:$0xff] %v231_v41  ;;  %v225_v50 = vadd.f32 %v217_v26, %v209_v42  ;;  %v229_v51 = vadd.f32 %v221_v27, %v213_v43 }
  0xec   :  { %v212_v52 = vmax.f32 %v204_v44, 0.0  ;;  %v216_v53 = vmax.f32 %v208_v45, 0.0  ;;  %v202_v54 = vadd.f32 %v258_v14, %v187_v46  ;;  %v206_v55 = vadd.f32 %v258_v14, %v191_v47 }
  0xed   :  { %233 = vst [vmem:[%s432_s4] sm:$0xff] %v225_v50  ;;  %237 = vst [vmem:[%s432_s4 + $0x20] sm:$0xff] %v229_v51 }
  0xee   :  { %v228_v56 = vadd.f32 %v220_v34, %v212_v52  ;;  %v232_v57 = vadd.f32 %v224_v35, %v216_v53  ;;  %v210_v58 = vmax.f32 %v202_v54, 0.0  ;;  %v214_v59 = vmax.f32 %v206_v55, 0.0 }
  0xf0   :  { %236 = vst [vmem:[%s432_s4 + $0x18] sm:$0xff] %v228_v56  ;;  %240 = vst [vmem:[%s432_s4 + $0x38] sm:$0xff] %v232_v57  ;;  %v226_v60 = vadd.f32 %v218_v48, %v210_v58  ;;  %v230_v61 = vadd.f32 %v222_v49, %v214_v59 }
  0xf2   :  { %234 = vst [vmem:[%s432_s4 + $0x8] sm:$0xff] %v226_v60  ;;  %238 = vst [vmem:[%s432_s4 + $0x28] sm:$0xff] %v230_v61 }

</bundles_post_ra>
